<compile_context>
chip_gen: v7x
topology: tpu7x:2x2x1
jax: 0.10.0
libtpu: 0.0.40
codegen_flags: <defaults>
</compile_context>

<pallas_src>
import math

import jax
import jax.numpy as jnp
from jax.experimental import pallas as pl
from jax.experimental.pallas import tpu as pltpu


LEAKY_SLOPE = 0.01  # nn.LeakyReLU default


# ---------------------------------------------------------------------------
# Kernels
# ---------------------------------------------------------------------------

def _accumulate(g_f32, w_ref, acc_ref):
    """Fused (tm, tk) x (tk, 2D) matmul accumulate over the K grid axis."""
    k = pl.program_id(1)

    @pl.when(k == 0)
    def _():
        acc_ref[...] = jnp.zeros_like(acc_ref)

    # Cast LHS to the (possibly bf16) weight dtype right before the MXU;
    # accumulation stays in f32.
    acc_ref[...] += jnp.dot(
        g_f32.astype(w_ref.dtype), w_ref[...],
        preferred_element_type=jnp.float32,
    )


def _epilogue(acc_ref, b_ref, y_ref, hn_ref):
    """Bias + LeakyReLU in f32, split the fused accumulator into y / h_new."""
    d = y_ref.shape[-1]
    v = acc_ref[...] + b_ref[...]                     # f32 bias add (VPU)
    v = jnp.maximum(v, LEAKY_SLOPE * v)               # LeakyReLU, 2 VPU ops
    y_ref[...] = v[:, :d].astype(y_ref.dtype)
    hn_ref[...] = v[:, d:].astype(hn_ref.dtype)


def rnn3_kernel_with_h(x_ref, h_ref, w_ref, b_ref, y_ref, hn_ref, acc_ref):
    g = x_ref[...].astype(jnp.float32) + h_ref[...].astype(jnp.float32)
    _accumulate(g, w_ref, acc_ref)

    @pl.when(pl.program_id(1) == pl.num_programs(1) - 1)
    def _():
        _epilogue(acc_ref, b_ref, y_ref, hn_ref)


def rnn3_kernel_ones_h(x_ref, w_ref, b_ref, y_ref, hn_ref, acc_ref):
    g = x_ref[...].astype(jnp.float32) + 1.0          # h == ones: no HBM buffer
    _accumulate(g, w_ref, acc_ref)

    @pl.when(pl.program_id(1) == pl.num_programs(1) - 1)
    def _():
        _epilogue(acc_ref, b_ref, y_ref, hn_ref)


# ---------------------------------------------------------------------------
# Parameter packing (done ONCE, outside the forward call)
# ---------------------------------------------------------------------------

def pack_params(params, *, use_bf16=True):
    """Pre-transpose and fuse the two projections: W (D, 2D), b (1, 2D).

    bf16 weights are the default: the kernel is weight-DMA-bound at RNN-scale
    batch, so halving weight bytes ~halves wall-clock. Pass use_bf16=False for
    an exact-f32 path.
    """
    D = params["wo"].shape[0]
    w = jnp.concatenate([params["wo"].T, params["wh"].T], axis=1)        # (D, 2D)
    b = jnp.concatenate([params["bo"], params["bh"]]).reshape(1, 2 * D)  # (1, 2D)
    if use_bf16:
        w = w.astype(jnp.bfloat16)
    return {"w": w, "b": b, "dim": D}


# ---------------------------------------------------------------------------
# Forward wrapper
# ---------------------------------------------------------------------------

def _pick_tile(dim, target):
    """Full-dim block for small dims, `target` when it divides evenly."""
    if dim <= target or dim % target != 0:
        return dim
    return target


def my_rnn3_forward(x, packed, h=None, *, tm=None, tk=None):
    """x: (B, D). packed: output of pack_params. Returns (y, h_new)."""
    B, D = x.shape
    w, b = packed["w"], packed["b"]
    N = 2 * D                                  # fused output width, NOT tiled

    tm = tm if tm is not None else _pick_tile(B, 256)
    tk = tk if tk is not None else _pick_tile(D, 512)
    assert B % tm == 0 and D % tk == 0, "tiles must divide dims"

    grid = (B // tm, D // tk)                  # (M, K) — N axis collapsed

    g_spec = pl.BlockSpec((tm, tk), lambda i, k: (i, k))    # x (and h)
    w_spec = pl.BlockSpec((tk, N), lambda i, k: (k, 0))     # packed weight
    b_spec = pl.BlockSpec((1, N), lambda i, k: (0, 0))      # packed bias
    y_spec = pl.BlockSpec((tm, D), lambda i, k: (i, 0))     # y (resident over K)
    hn_spec = pl.BlockSpec((tm, D), lambda i, k: (i, 0))    # h_new (resident)

    out_shape = (jax.ShapeDtypeStruct((B, D), x.dtype),
                 jax.ShapeDtypeStruct((B, D), x.dtype))

    if h is None:
        kernel = rnn3_kernel_ones_h
        inputs = (x, w, b)
        in_specs = [g_spec, w_spec, b_spec]
        n_xh = 1
    else:
        kernel = rnn3_kernel_with_h
        inputs = (x, h, w, b)
        in_specs = [g_spec, g_spec, w_spec, b_spec]
        n_xh = 2

    # VMEM budget: double-buffered inputs + double-buffered resident outputs
    # + f32 accumulator. Only raise the scoped limit if we actually need to.
    isz_x = jnp.dtype(x.dtype).itemsize
    isz_w = jnp.dtype(w.dtype).itemsize
    needed = (2 * (n_xh * tm * tk * isz_x + tk * N * isz_w + N * 4)
              + 2 * 2 * tm * D * isz_x
              + tm * N * 4)
    vmem_limit = int(needed * 1.25) if needed > (32 << 20) else None

    y, h_new = pl.pallas_call(
        kernel,
        out_shape=out_shape,
        grid_spec=pltpu.PrefetchScalarGridSpec(
            num_scalar_prefetch=0,
            grid=grid,
            in_specs=in_specs,
            out_specs=[y_spec, hn_spec],
            scratch_shapes=[pltpu.VMEM((tm, N), jnp.float32)],
        ),
        compiler_params=pltpu.CompilerParams(
            # M parallel (megacore sharding), K is the only reduction axis.
            dimension_semantics=("parallel", "arbitrary"),
            vmem_limit_bytes=vmem_limit,
        ),
    )(*inputs)

    return y, h_new


# ---------------------------------------------------------------------------
# Init + pure-JAX reference
# ---------------------------------------------------------------------------

def init_params(key, dim):
    """Deterministic init mimicking nn.Linear's default (Kaiming-uniform)."""
    k_wo, k_bo, k_wh, k_bh = jax.random.split(key, 4)
    bound = 1.0 / math.sqrt(dim)
    return {
        "wo": jax.random.uniform(k_wo, (dim, dim), jnp.float32, -bound, bound),
        "bo": jax.random.uniform(k_bo, (dim,), jnp.float32, -bound, bound),
        "wh": jax.random.uniform(k_wh, (dim, dim), jnp.float32, -bound, bound),
        "bh": jax.random.uniform(k_bh, (dim,), jnp.float32, -bound, bound),
    }


def _reference(x, params, h=None):
    if h is None:
        h = jnp.ones_like(x)
    g = x + h
    y = g @ params["wo"].T + params["bo"]
    y = jnp.where(y > 0, y, LEAKY_SLOPE * y)
    hn = g @ params["wh"].T + params["bh"]
    hn = jnp.where(hn > 0, hn, LEAKY_SLOPE * hn)
    return y, hn


# ---------------------------------------------------------------------------
# Demo / self-test
# ---------------------------------------------------------------------------

if __name__ == "__main__":
    key = jax.random.PRNGKey(0)
    k_x, k_h, k_p, k_x2, k_h2, k_p2 = jax.random.split(key, 6)

    # --- small case, f32 weights, h=None path (h := ones in-kernel) --------
    B, D = 8, 32
    x = jax.random.normal(k_x, (B, D), dtype=jnp.float32)
    params = init_params(k_p, D)
    packed_f32 = pack_params(params, use_bf16=False)

    y, h_new = my_rnn3_forward(x, packed_f32)              # h=None
    jax.block_until_ready((y, h_new))
    y_ref, h_ref = _reference(x, params)
    assert jnp.allclose(y, y_ref, atol=1e-5, rtol=1e-5)
    assert jnp.allclose(h_new, h_ref, atol=1e-5, rtol=1e-5)

    # --- small case, f32 weights, explicit h --------------------------------
    h_in = jax.random.normal(k_h, (B, D), dtype=jnp.float32)
    y, h_new = my_rnn3_forward(x, packed_f32, h_in)
    jax.block_until_ready((y, h_new))
    y_ref, h_ref = _reference(x, params, h_in)
    assert jnp.allclose(y, y_ref, atol=1e-5, rtol=1e-5)
    assert jnp.allclose(h_new, h_ref, atol=1e-5, rtol=1e-5)

    # --- default packing (bf16 MXU operands, f32 accumulate), looser tol ----
    packed_bf16 = pack_params(params)                      # use_bf16=True default
    y, h_new = my_rnn3_forward(x, packed_bf16, h_in)
    jax.block_until_ready((y, h_new))
    assert jnp.allclose(y, y_ref, atol=5e-2, rtol=5e-2)
    assert jnp.allclose(h_new, h_ref, atol=5e-2, rtol=5e-2)

    # --- multi-tile grid exercise: grid=(2, 2) over (M, K) ------------------
    B2, D2 = 16, 256
    x2 = jax.random.normal(k_x2, (B2, D2), dtype=jnp.float32)
    h2 = jax.random.normal(k_h2, (B2, D2), dtype=jnp.float32)
    params2 = init_params(k_p2, D2)
    packed2 = pack_params(params2, use_bf16=False)
    y2, hn2 = my_rnn3_forward(x2, packed2, h2, tm=8, tk=128)
    jax.block_until_ready((y2, hn2))
    y2_ref, hn2_ref = _reference(x2, params2, h2)
    assert jnp.allclose(y2, y2_ref, atol=1e-4, rtol=1e-4)
    assert jnp.allclose(hn2, hn2_ref, atol=1e-4, rtol=1e-4)

    print("KERNEL_OK")
</pallas_src>

<mosaic_0001>
module attributes {stable_mosaic.version = 11 : i64} {
  func.func @rnn3_kernel_ones_h(%arg0: i32, %arg1: i32, %arg2: memref<8x32xf32, #tpu.memory_space<vmem>>, %arg3: memref<32x64xf32, #tpu.memory_space<vmem>>, %arg4: memref<1x64xf32, #tpu.memory_space<vmem>>, %arg5: memref<8x32xf32, #tpu.memory_space<vmem>>, %arg6: memref<8x32xf32, #tpu.memory_space<vmem>>, %arg7: memref<8x64xf32, #tpu.memory_space<vmem>>) attributes {dimension_semantics = [#tpu.dimension_semantics<parallel>, #tpu.dimension_semantics<arbitrary>], iteration_bounds = array<i64: 1, 1>, scalar_prefetch = 0 : i64, scratch_operands = 1 : i64, tpu.core_type = #tpu.core_type<tc>, window_params = [{transform_indices = @transform_0, window_bounds = array<i64: 8, 32>}, {transform_indices = @transform_1, window_bounds = array<i64: 32, 64>}, {pipeline_mode = #tpu.pipeline_mode<synchronous>, transform_indices = @transform_2, window_bounds = array<i64: 1, 64>}, {transform_indices = @transform_3, window_bounds = array<i64: 8, 32>}, {transform_indices = @transform_4, window_bounds = array<i64: 8, 32>}]} {
    %c0 = arith.constant 0 : index
    %c0_0 = arith.constant 0 : index
    %0 = vector.load %arg2[%c0, %c0_0] : memref<8x32xf32, #tpu.memory_space<vmem>>, vector<8x32xf32>
    %cst = arith.constant 1.000000e+00 : f32
    %1 = vector.broadcast %cst : f32 to vector<8x32xf32>
    %2 = arith.addf %0, %1 : vector<8x32xf32>
    %c0_i32 = arith.constant 0 : i32
    %3 = arith.cmpi eq, %arg1, %c0_i32 : i32
    %4 = arith.extui %3 : i1 to i32
    %c0_i32_1 = arith.constant 0 : i32
    %5 = arith.cmpi ne, %4, %c0_i32_1 : i32
    scf.if %5 {
      %cst_11 = arith.constant 0.000000e+00 : f32
      %14 = vector.broadcast %cst_11 : f32 to vector<8x64xf32>
      %c0_12 = arith.constant 0 : index
      %c0_13 = arith.constant 0 : index
      %15 = vector.load %arg7[%c0_12, %c0_13] : memref<8x64xf32, #tpu.memory_space<vmem>>, vector<8x64xf32>
      tpu.vector_store %arg7[%c0_12, %c0_13], %14 {strides = array<i32>} : memref<8x64xf32, #tpu.memory_space<vmem>>, vector<8x64xf32>,
    } else {
    }
    %c0_2 = arith.constant 0 : index
    %c0_3 = arith.constant 0 : index
    %6 = vector.load %arg7[%c0_2, %c0_3] : memref<8x64xf32, #tpu.memory_space<vmem>>, vector<8x64xf32>
    %c0_4 = arith.constant 0 : index
    %c0_5 = arith.constant 0 : index
    %7 = vector.load %arg3[%c0_4, %c0_5] : memref<32x64xf32, #tpu.memory_space<vmem>>, vector<32x64xf32>
    %cst_6 = arith.constant dense<0.000000e+00> : vector<8x64xf32>
    %8 = tpu.matmul %2, %7, %cst_6 {dimension_numbers = #tpu.dot_dimension_numbers<[1], [0], [0], [1], [0, 0, 1, 1], [], []>} : vector<8x32xf32>, vector<32x64xf32>, vector<8x64xf32> -> vector<8x64xf32>
    %9 = arith.addf %6, %8 : vector<8x64xf32>
    %c0_7 = arith.constant 0 : index
    %c0_8 = arith.constant 0 : index
    %10 = vector.load %arg7[%c0_7, %c0_8] : memref<8x64xf32, #tpu.memory_space<vmem>>, vector<8x64xf32>
    tpu.vector_store %arg7[%c0_7, %c0_8], %9 {strides = array<i32>} : memref<8x64xf32, #tpu.memory_space<vmem>>, vector<8x64xf32>,
    %c0_i32_9 = arith.constant 0 : i32
    %11 = arith.cmpi eq, %arg1, %c0_i32_9 : i32
    %12 = arith.extui %11 : i1 to i32
    %c0_i32_10 = arith.constant 0 : i32
    %13 = arith.cmpi ne, %12, %c0_i32_10 : i32
    scf.if %13 {
      %c0_11 = arith.constant 0 : index
      %c0_12 = arith.constant 0 : index
      %14 = vector.load %arg7[%c0_11, %c0_12] : memref<8x64xf32, #tpu.memory_space<vmem>>, vector<8x64xf32>
      %c0_13 = arith.constant 0 : index
      %c0_14 = arith.constant 0 : index
      %15 = vector.load %arg4[%c0_13, %c0_14] : memref<1x64xf32, #tpu.memory_space<vmem>>, vector<1x64xf32>
      %16 = vector.broadcast %15 : vector<1x64xf32> to vector<8x64xf32>
      %17 = arith.addf %14, %16 : vector<8x64xf32>
      %cst_15 = arith.constant 0.00999999977 : f32
      %18 = vector.broadcast %cst_15 : f32 to vector<8x64xf32>
      %19 = arith.mulf %18, %17 : vector<8x64xf32>
      %20 = arith.maximumf %17, %19 : vector<8x64xf32>
      %21 = vector.extract_strided_slice %20 {offsets = [0, 0], sizes = [8, 32], strides = [1, 1]} : vector<8x64xf32> to vector<8x32xf32>
      %c0_16 = arith.constant 0 : index
      %c0_17 = arith.constant 0 : index
      %22 = vector.load %arg5[%c0_16, %c0_17] : memref<8x32xf32, #tpu.memory_space<vmem>>, vector<8x32xf32>
      tpu.vector_store %arg5[%c0_16, %c0_17], %21 {strides = array<i32>} : memref<8x32xf32, #tpu.memory_space<vmem>>, vector<8x32xf32>,
      %23 = vector.extract_strided_slice %20 {offsets = [0, 32], sizes = [8, 32], strides = [1, 1]} : vector<8x64xf32> to vector<8x32xf32>
      %c0_18 = arith.constant 0 : index
      %c0_19 = arith.constant 0 : index
      %24 = vector.load %arg6[%c0_18, %c0_19] : memref<8x32xf32, #tpu.memory_space<vmem>>, vector<8x32xf32>
      tpu.vector_store %arg6[%c0_18, %c0_19], %23 {strides = array<i32>} : memref<8x32xf32, #tpu.memory_space<vmem>>, vector<8x32xf32>,
    } else {
    }
    return
  }
  func.func @transform_0(%arg0: i32, %arg1: i32) -> (i32, i32) {
    %c0_i32 = arith.constant 0 : i32
    return %arg0, %arg1 : i32, i32
  }
  func.func @transform_1(%arg0: i32, %arg1: i32) -> (i32, i32) {
    %c0_i32 = arith.constant 0 : i32
    %c0_i32_0 = arith.constant 0 : i32
    return %arg1, %c0_i32 : i32, i32
  }
  func.func @transform_2(%arg0: i32, %arg1: i32) -> (i32, i32) {
    %c0_i32 = arith.constant 0 : i32
    %c0_i32_0 = arith.constant 0 : i32
    %c0_i32_1 = arith.constant 0 : i32
    return %c0_i32, %c0_i32_0 : i32, i32
  }
  func.func @transform_3(%arg0: i32, %arg1: i32) -> (i32, i32) {
    %c0_i32 = arith.constant 0 : i32
    %c0_i32_0 = arith.constant 0 : i32
    return %arg0, %c0_i32 : i32, i32
  }
  func.func @transform_4(%arg0: i32, %arg1: i32) -> (i32, i32) {
    %c0_i32 = arith.constant 0 : i32
    %c0_i32_0 = arith.constant 0 : i32
    return %arg0, %c0_i32 : i32, i32
  }
}

</mosaic_0001>

<bundles_post_ra>
// kernel: tpu_custom_call.1
= control target key start
LH: loop header
LB: loop body
LE: loop exit
PB: predicated region body
PF: predicated region fallthrough
CT: control target
= control target key end

     0   :  { %10 = vsyncpa [#allocation4], 0  ;;  %s412_s0 = inlined_call_operand.hbm [shape: f32[8,32], index: 0, kind: input, shape index: {}]   ;;  %s413_s1 = inlined_call_operand.hbm [shape: f32[32,64], index: 1, kind: input, shape index: {}]   ;;  %s414_s2 = inlined_call_operand.vmem [shape: f32[1,64], index: 2, kind: input, shape index: {}]   ;;  %s415_s3 = inlined_call_operand.hbm [shape: f32[8,32], index: 3, kind: output, shape index: {0}]   ;;  %s416_s4 = inlined_call_operand.hbm [shape: f32[8,32], index: 4, kind: output, shape index: {1}]  }
   0x1   :  { %11 = vsyncpa [#allocation7], 0 }
   0x2   :  { %12 = vsyncpa [#allocation5], 0 }
   0x3   :  { %13 = vsyncpa [#allocation10], 0  ;;  %s314_s15 = smov [#allocation3]   ;;  %s315_s17 = smov [#allocation6]  }
   0x4   :  { %s20_s16 = sshll.u32 %s314_s15, 4  ;;  %s29_s18 = sshll.u32 %s315_s17, 4  ;;  %s21_s16 = int_to_ptr.vmem [resolvable:$true] %s20_s16  ;;  %s349_s18 = int_to_ptr.vmem [resolvable:$true] %s29_s18 }
   0x5   :  { %s218_s21 = scalar_lea.hbm %s412_s0, 128 }
   0x6   :  { %p219_p0 = scmp.ne.s32.totalorder %s412_s0, %s218_s21  ;;  %p222_p1 = scmp.lt.u32.totalorder %s218_s21, %s412_s0 }
   0x8   :  { %p224_p2 = pnand %p222_p1, %p219_p0 }
   0xa   :  { %227 = shalt.err (!%p224_p2)
}
   0xb   :  { %s228_s26 = scalar_lea.vmem %s21_s16, 128  ;;  %p233_p4 = scmp.lt.s32.totalorder %s21_s16, %s21_s16 }
   0xc   :  { %p229_p3 = scmp.ne.s32.totalorder %s21_s16, %s228_s26  ;;  %p234_p5 = scmp.lt.s32.totalorder %s228_s26, %s228_s26 }
   0xe   :  { %p235_p6 = por %p234_p5, %p233_p4 }
  0x10   :  { %p236_p7 = pnand %p235_p6, %p229_p3 }
  0x12   :  { %239 = shalt.err (!%p236_p7)
}
  0x13   :  { %23 = dma.hbm_to_vmem [thread:$0]  %s412_s0, 128, %s21_s16, [#allocation4]  }
  0x14   :  { %s240_s5 = scalar_lea.hbm %s413_s1, 512 }
  0x15   :  { %p241_p8 = scmp.ne.s32.totalorder %s413_s1, %s240_s5  ;;  %p244_p9 = scmp.lt.u32.totalorder %s240_s5, %s413_s1 }
  0x17   :  { %p246_p10 = pnand %p244_p9, %p241_p8 }
  0x19   :  { %249 = shalt.err (!%p246_p10)
}
  0x1a   :  { %s250_s10 = scalar_lea.vmem %s349_s18, 512  ;;  %p255_p12 = scmp.lt.s32.totalorder %s349_s18, %s349_s18 }
  0x1b   :  { %p251_p11 = scmp.ne.s32.totalorder %s349_s18, %s250_s10  ;;  %p256_p13 = scmp.lt.s32.totalorder %s250_s10, %s250_s10 }
  0x1d   :  { %p257_p0 = por %p256_p13, %p255_p12 }
  0x1f   :  { %p258_p1 = pnand %p257_p0, %p251_p11 }
  0x21   :  { %261 = shalt.err (!%p258_p1)
}
  0x22   :  { %s316_s0 = smov 128   ;;  %s317_s11 = smov 8  }
  0x23   :  { %35 = dma.hbm_to_vmem [thread:$0]  %s413_s1, 512, %s349_s18, [#allocation7], %s316_s0, %s316_s0, %s317_s11  }
  0x24   :  { %306 = dma.done.wait [#allocation4], 128  }
  0x25   :  { %307 = vsyncadd [#allocation4], 4294967168 }
  0x26   :  { %308 = dma.done.wait [#allocation7], 512  }
  0x27   :  { %309 = vsyncadd [#allocation7], 4294966784  ;;  %vm50_vm0 = vcmask 523264   ;;  %v318_v0 = vmov 0.0|0.0   ;;  %v319_v1 = vmov 0.0   ;;  %vm320_vm1 = vmmov 0  }
  0x28   :  { %202 = vmatprep.subr.bf16.mxu0 %v318_v0  ;;  %51 = vst.msk [vmem:[#allocation2] sm:$0xff] %vm50_vm0, %v319_v1  ;;  %199 = vmatprep.mubr.msk.f32.mxu0 %vm320_vm1, %v319_v1  ;;  %v53_v2 = vld [vmem:[#allocation6] sm:$0xff]  ;;  %v54_v3 = vld [vmem:[#allocation6 + $0x8] sm:$0xff]  ;;  %v55_v4 = vld [vmem:[#allocation6 + $0x10] sm:$0xff]  ;;  %vm57_vm2 = vcmask 261120   ;;  %s321_s15 = smov [#allocation8]  }
  0x29   :  { %v203_v5 = vpack.c.bf16 %v54_v3, %v53_v2  ;;  %v56_v6 = vld [vmem:[#allocation6 + $0x18] sm:$0xff]  ;;  %v185_v14 = vld [vmem:[%s414_s2] ss:$0 sm:$0xff]  ;;  %s160_s16 = sshll.u32 %s321_s15, 4  ;;  %s322_s17 = smov 96   ;;  %s161_s16 = int_to_ptr.vmem [resolvable:$true] %s160_s16 }
  0x2a   :  { %v206_v7 = vpack.c.bf16 %v56_v6, %v55_v4  ;;  %v44_v8 = vld [vmem:[#allocation3] sm:$0xff]  ;;  %s262_s18 = scalar_lea.vmem %s161_s16, 128  ;;  %p267_p3 = scmp.lt.s32.totalorder %s161_s16, %s161_s16 }
  0x2b   :  { %204 = vmatpush3.bf16.msra.mxu0 %v203_v5  ;;  %v45_v9 = vadd.f32 1.0, %v44_v8  ;;  %p263_p2 = scmp.ne.s32.totalorder %s161_s16, %s262_s18  ;;  %p268_p4 = scmp.lt.s32.totalorder %s262_s18, %s262_s18 }
  0x2c   :  { %205 = vmatprep.subr.bf16.mxu0 %v318_v0 }
  0x2d   :  { %p269_p5 = por %p268_p4, %p267_p3 }
  0x2f   :  { %207 = vmatpush3.bf16.msra.mxu0 %v206_v7  ;;  %v52_v10 = vld [vmem:[#allocation2] sm:$0xff]  ;;  %p270_p6 = pnand %p269_p5, %p263_p2 }
  0x32   :  { %200 = vmatmul.mubr.msk.f32.vlgmr.msra.gmra.mrb[0].mxu0 %vm57_vm2, %v45_v9 }
 0x105   :  { %v127_v11 = vpop.f32.mrb[0].mxu0 }
 0x106   :  { %v131_v12 = vadd.f32 %v127_v11, %v52_v10  ;;  %v201_v13 = vpop.f32.mrb[1].mxu0 }
 0x108   :  { %133 = vst.msk [vmem:[#allocation2] sm:$0xff] %vm50_vm0, %v131_v12 }
 0x10f   :  { %v137_v15 = vld [vmem:[#allocation2] sm:$0xff] }
 0x110   :  { %v145_v16 = vadd.f32 %v185_v14, %v137_v15 }
 0x112   :  { %v146_v17 = vmul.f32 0.01, %v145_v16 }
 0x114   :  { %v147_v18 = vmax.f32 %v145_v16, %v146_v17 }
 0x116   :  { %150 = vrot.lane.b32.xlu0 %v147_v18, %s322_s17  ;;  %148 = vst.msk [vmem:[#allocation8] sm:$0xff] %vm57_vm2, %v147_v18 }
 0x117   :  { %273 = shalt.err (!%p270_p6)
}
 0x118   :  { %s274_s20 = scalar_lea.hbm %s415_s3, 128 }
 0x119   :  { %p275_p7 = scmp.ne.s32.totalorder %s415_s3, %s274_s20  ;;  %p278_p8 = scmp.lt.u32.totalorder %s274_s20, %s415_s3 }
 0x11b   :  { %p280_p9 = pnand %p278_p8, %p275_p7 }
 0x11d   :  { %283 = shalt.err (!%p280_p9)
}
 0x11e   :  { %163 = dma.vmem_to_hbm [thread:$0]  %s161_s16, 128, %s415_s3, [#allocation5]  }
 0x11f   :  { %s323_s27 = smov [#allocation9]  }
 0x120   :  { %s170_s28 = sshll.u32 %s323_s27, 4  ;;  %s171_s28 = int_to_ptr.vmem [resolvable:$true] %s170_s28 }
 0x121   :  { %s284_s29 = scalar_lea.vmem %s171_s28, 128  ;;  %p289_p11 = scmp.lt.s32.totalorder %s171_s28, %s171_s28 }
 0x122   :  { %p285_p10 = scmp.ne.s32.totalorder %s171_s28, %s284_s29  ;;  %p290_p12 = scmp.lt.s32.totalorder %s284_s29, %s284_s29 }
 0x124   :  { %p291_p13 = por %p290_p12, %p289_p11 }
 0x126   :  { %p292_p0 = pnand %p291_p13, %p285_p10 }
 0x188   :  { %v151_v19 = vpop.permute.xlu0 %150 }
 0x189   :  { %153 = vst.msk [vmem:[#allocation9] sm:$0xff] %vm57_vm2, %v151_v19 }
 0x18a   :  { %295 = shalt.err (!%p292_p0)
}
 0x18b   :  { %s296_s6 = scalar_lea.hbm %s416_s4, 128 }
 0x18c   :  { %p297_p1 = scmp.ne.s32.totalorder %s416_s4, %s296_s6  ;;  %p300_p2 = scmp.lt.u32.totalorder %s296_s6, %s416_s4 }
 0x18e   :  { %p302_p3 = pnand %p300_p2, %p297_p1 }
 0x190   :  { %305 = shalt.err (!%p302_p3)
}
 0x191   :  { %173 = dma.vmem_to_hbm [thread:$0]  %s171_s28, 128, %s416_s4, [#allocation10]  }
 0x192   :  { %310 = dma.done.wait [#allocation5], 128  }
 0x193   :  { %311 = vsyncadd [#allocation5], 4294967168 }
 0x194   :  { %312 = dma.done.wait [#allocation10], 128  }
 0x195   :  { %313 = vsyncadd [#allocation10], 4294967168 }
 0x196   :  { %180 = vsyncpa [#allocation4], 1 }
 0x197   :  { %181 = vsyncpa [#allocation7], 1 }
 0x198   :  { %182 = vsyncpa [#allocation5], 1 }
 0x199   :  { %183 = vsyncpa [#allocation10], 1 }

</bundles_post_ra>
